<compile_context>
chip_gen: v5e
topology: v5e:2x2
jax: 0.10.0
libtpu: 0.0.40
codegen_flags: <defaults>
</compile_context>

<pallas_src>
import functools

import jax
import jax.numpy as jnp
from jax.experimental import pallas as pl
from jax.experimental.pallas import tpu as pltpu


def _round_up(x, m):
    return (x + m - 1) // m * m


def _cdiv(a, b):
    return -(-a // b)


# ---------------------------------------------------------------------------
# Kernel
# ---------------------------------------------------------------------------
def _dueling_kernel(num_actions, head_programs, fused,
                    x_ref, w_ref, b_ref, out_ref):
    """One batch tile of the dueling forward.

    x_ref  : (TB, d0)             observation tile (native lane width)
    w_ref  : (rows, out_max)      packed weights, zero padded, VMEM resident
    b_ref  : (n_layers, out_max)  packed biases,  zero padded, VMEM resident
    out_ref: (TB, out_pad)        cols [0, num_actions) hold the Q values
    head_programs: static, per head: tuple of (row, in_rows, out_cols, b_row)
    """
    def run_mlp(layers):
        y = x_ref[...]
        for l, (row, rin, cout, brow) in enumerate(layers):
            if l > 0:
                y = jnp.tanh(y)                          # EUP slot, f32 (v5e-safe)
            w = w_ref[row:row + rin, 0:cout]             # static, tile-aligned
            b = b_ref[brow:brow + 1, 0:cout]             # (1, cout) broadcast
            y = jnp.dot(y, w, preferred_element_type=jnp.float32) + b
        return y

    inv_a = 1.0 / num_actions
    if fused:
        # Single fused MLP: last layer emits [advantage(A) | value | zeros].
        y = run_mlp(head_programs[0])
        value = y[:, num_actions:num_actions + 1]
        # Padded lanes are exactly zero -> clean full-lane reduce, then drop
        # the value column from the total (cheaper than an 8-lane slice sum).
        adv_sum = jnp.sum(y, axis=-1, keepdims=True) - value
        out_ref[...] = y + (value - adv_sum * inv_a)
    else:
        adv = run_mlp(head_programs[0])                  # cols [0, A) advantage
        val = run_mlp(head_programs[1])                  # col 0 is the value
        value = val[:, 0:1]
        adv_sum = jnp.sum(adv, axis=-1, keepdims=True)   # padded lanes are zero
        out_ref[...] = adv + (value - adv_sum * inv_a)


# ---------------------------------------------------------------------------
# Head fusion & slab packing (host-side, pure JAX; cacheable per model)
# ---------------------------------------------------------------------------
def _try_fuse_heads(adv_params, val_params):
    """Merge the two heads into one MLP, or return None if not profitable.

    Layer 0 concatenates along the output dim (shared input), deeper layers
    are block-diagonal, the final layer emits [advantage | value].  The
    block-diagonal trick is only free while each fused hidden width fits in a
    single 128-lane tile; beyond that the zero blocks become real MXU work, so
    we fall back to evaluating the heads separately (also used when the heads
    have different depths).
    """
    if len(adv_params) != len(val_params):
        return None
    for (wa, _), (wv, _) in zip(adv_params[:-1], val_params[:-1]):
        if wa.shape[1] + wv.shape[1] > 128:
            return None
    fused = []
    for l, ((wa, ba), (wv, bv)) in enumerate(zip(adv_params, val_params)):
        if l == 0:
            w = jnp.concatenate([wa, wv], axis=1)
        else:
            za = jnp.zeros((wa.shape[0], wv.shape[1]), wa.dtype)
            zv = jnp.zeros((wv.shape[0], wa.shape[1]), wv.dtype)
            w = jnp.concatenate(
                [jnp.concatenate([wa, za], axis=1),
                 jnp.concatenate([zv, wv], axis=1)], axis=0)
        b = jnp.concatenate([ba, bv], axis=0)
        fused.append((w, b))
    return fused


def _pack_heads(heads_params, obs_dim):
    """Pack all layers of all heads into one weight slab + one bias slab.

    Per-layer row offsets are sublane (8) aligned, per-layer output widths are
    lane (128) aligned, and all padding is exactly zero so padded activation
    lanes stay zero through the whole network.
    """
    d0 = _round_up(obs_dim, 8)
    programs, layer_meta = [], []
    rows, out_max = 0, 128
    for params in heads_params:
        prog, rin = [], d0
        for w, b in params:
            cout = _round_up(w.shape[1], 128)
            out_max = max(out_max, cout)
            prog.append((rows, rin, cout, len(layer_meta)))
            layer_meta.append((rows, w, b))
            rows += rin
            rin = cout
        programs.append(tuple(prog))

    w_slab = jnp.zeros((_round_up(rows, 8), out_max), jnp.float32)
    b_slab = jnp.zeros((len(layer_meta), out_max), jnp.float32)
    for i, (row, w, b) in enumerate(layer_meta):
        w_slab = w_slab.at[row:row + w.shape[0], :w.shape[1]].set(
            w.astype(jnp.float32))
        b_slab = b_slab.at[i, :b.shape[0]].set(b.astype(jnp.float32))
    return w_slab, b_slab, tuple(programs)


# ---------------------------------------------------------------------------
# Batch tiling
# ---------------------------------------------------------------------------
def _choose_batch_tiling(batch, max_tile=1024):
    """Pick (tile_rows, padded_batch).

    * tiles are multiples of 8 rows, capped near max_tile (512-1024 regime),
    * >= 2 grid steps whenever the batch allows two >=8-row tiles, so v7x's
      two TensorCores both get work (costs one ~0.35us extra step on single-TC
      v5e/v6e, which is negligible),
    * an even step count, with the last tile wasting only a few padded rows
      instead of burning a whole grid step on zeros.
    """
    if batch < 16:
        tb = _round_up(batch, 8)
        return tb, tb
    n_steps = max(2, _cdiv(batch, max_tile))
    if n_steps % 2:
        n_steps += 1
    tb = _round_up(_cdiv(batch, n_steps), 8)
    n_steps = _cdiv(batch, tb)
    return tb, tb * n_steps


# ---------------------------------------------------------------------------
# Wrapper
# ---------------------------------------------------------------------------
def dueling_dqn_forward(observation, adv_params, val_params, num_actions):
    observation = jnp.asarray(observation, jnp.float32)
    batch, obs_dim = observation.shape

    # In a real agent the fusion/packing below is done once per parameter
    # update and cached; only the observation handling is per-forward.
    fused_params = _try_fuse_heads(adv_params, val_params)
    if fused_params is not None:
        heads, fused = [fused_params], True
    else:
        heads, fused = [adv_params, val_params], False
    w_slab, b_slab, programs = _pack_heads(heads, obs_dim)

    d0 = _round_up(obs_dim, 8)               # sublane-aligned obs lane width
    out_pad = programs[0][-1][2]             # lane-dense (multiple of 128)
    tb, batch_pad = _choose_batch_tiling(batch)

    # Single (tiny) pad only when needed: batch-tile rows and/or a few lanes
    # to reach a sublane multiple.  No 128-lane widening pass anymore.
    pad_r, pad_c = batch_pad - batch, d0 - obs_dim
    x = observation if (pad_r == 0 and pad_c == 0) else jnp.pad(
        observation, ((0, pad_r), (0, pad_c)))

    kernel = functools.partial(_dueling_kernel, num_actions, programs, fused)

    # VMEM budget: 2x(x tile) + 2x(out tile) + resident slabs + activation
    # headroom, with margin; kept under v7x's 64 MiB physical VMEM.
    elt = 4
    vmem_est = (2 * tb * d0 + 2 * tb * out_pad
                + w_slab.size + b_slab.size
                + 6 * tb * max(out_pad, w_slab.shape[1])) * elt
    vmem_limit = int(min(max(4 * vmem_est, 8 << 20), 48 << 20))

    def build(single_buffer_slabs):
        slab_kwargs = (dict(pipeline_mode=pl.Buffered(buffer_count=1))
                       if single_buffer_slabs else {})
        return pl.pallas_call(
            kernel,
            out_shape=jax.ShapeDtypeStruct((batch_pad, out_pad), jnp.float32),
            grid=(batch_pad // tb,),
            in_specs=[
                pl.BlockSpec((tb, d0), lambda i: (i, 0)),          # batch tile
                pl.BlockSpec(w_slab.shape, lambda i: (0, 0), **slab_kwargs),
                pl.BlockSpec(b_slab.shape, lambda i: (0, 0), **slab_kwargs),
            ],
            out_specs=pl.BlockSpec((tb, out_pad), lambda i: (i, 0)),
            compiler_params=pltpu.CompilerParams(
                dimension_semantics=("parallel",),
                vmem_limit_bytes=vmem_limit),
        )

    try:
        q_pad = build(True)(x, w_slab, b_slab)
    except Exception:
        # TODO(synk): pipeline_mode=pl.Buffered(1) not supported by this jax
        # version for pallas_call; fall back to default double-buffered slabs.
        q_pad = build(False)(x, w_slab, b_slab)

    # Required: padded rows / extra lanes carry garbage and must be sliced off.
    return q_pad[:batch, :num_actions]


# ---------------------------------------------------------------------------
# Reference + init (torch.nn.Linear-style, stored as (in, out))
# ---------------------------------------------------------------------------
def init_nn_params(key, in_size, out_size, layers):
    params = []
    sizes = list(layers) + [out_size]
    cur_in = in_size
    for out in sizes:
        key, kw, kb = jax.random.split(key, 3)
        bound = 1.0 / (cur_in ** 0.5)
        w = jax.random.uniform(kw, (cur_in, out), jnp.float32, -bound, bound)
        b = jax.random.uniform(kb, (out,), jnp.float32, -bound, bound)
        params.append((w, b))
        cur_in = out
    return params, key


def dueling_dqn_reference(observation, adv_params, val_params, num_actions):
    def mlp(x, params):
        w, b = params[0]
        y = x @ w + b
        for w, b in params[1:]:
            y = jnp.tanh(y)
            y = y @ w + b
        return y

    advantage = mlp(observation, adv_params)
    value = mlp(observation, val_params)
    return value + advantage - jnp.sum(advantage, axis=-1, keepdims=True) / num_actions


if __name__ == "__main__":
    key = jax.random.PRNGKey(0)

    # --- Config A: equal-depth narrow heads -> fully fused single-MLP path.
    batch, obs_dim, num_actions = 64, 32, 8
    adv_params, key = init_nn_params(key, obs_dim, num_actions, [32])
    val_params, key = init_nn_params(key, obs_dim, 1, [32])
    key, kx = jax.random.split(key)
    obs = jax.random.normal(kx, (batch, obs_dim), jnp.float32)
    out = jax.block_until_ready(
        dueling_dqn_forward(obs, adv_params, val_params, num_actions))
    ref = dueling_dqn_reference(obs, adv_params, val_params, num_actions)
    assert out.shape == (batch, num_actions)
    assert jnp.allclose(out, ref, atol=5e-5, rtol=5e-5), "fused path mismatch"

    # --- Config B: wide hidden + unequal depths -> separate-head path
    # (no block-diagonal MXU waste), ragged batch exercises the pad path.
    batch, obs_dim, num_actions = 44, 24, 6
    adv_params, key = init_nn_params(key, obs_dim, num_actions, [160])
    val_params, key = init_nn_params(key, obs_dim, 1, [64, 32])
    key, kx = jax.random.split(key)
    obs = jax.random.normal(kx, (batch, obs_dim), jnp.float32)
    out = jax.block_until_ready(
        dueling_dqn_forward(obs, adv_params, val_params, num_actions))
    ref = dueling_dqn_reference(obs, adv_params, val_params, num_actions)
    assert out.shape == (batch, num_actions)
    assert jnp.allclose(out, ref, atol=5e-5, rtol=5e-5), "separate path mismatch"

    print("KERNEL_OK")
</pallas_src>

<mosaic_0001>
module attributes {stable_mosaic.version = 11 : i64} {
  func.func @_dueling_kernel(%arg0: i32, %arg1: memref<32x32xf32, #tpu.memory_space<vmem>>, %arg2: memref<160x128xf32, #tpu.memory_space<vmem>>, %arg3: memref<2x128xf32, #tpu.memory_space<vmem>>, %arg4: memref<32x128xf32, #tpu.memory_space<vmem>>) attributes {dimension_semantics = [#tpu.dimension_semantics<parallel>], iteration_bounds = array<i64: 2>, scalar_prefetch = 0 : i64, scratch_operands = 0 : i64, tpu.core_type = #tpu.core_type<tc>, window_params = [{transform_indices = @transform_0, window_bounds = array<i64: 32, 32>}, {pipeline_mode = #tpu.pipeline_mode<synchronous>, transform_indices = @transform_1, window_bounds = array<i64: 160, 128>}, {pipeline_mode = #tpu.pipeline_mode<synchronous>, transform_indices = @transform_2, window_bounds = array<i64: 2, 128>}, {transform_indices = @transform_3, window_bounds = array<i64: 32, 128>}]} {
    %c0 = arith.constant 0 : index
    %c0_0 = arith.constant 0 : index
    %0 = vector.load %arg1[%c0, %c0_0] : memref<32x32xf32, #tpu.memory_space<vmem>>, vector<32x32xf32>
    %c0_1 = arith.constant 0 : index
    %c0_2 = arith.constant 0 : index
    %1 = vector.load %arg2[%c0_1, %c0_2] : memref<160x128xf32, #tpu.memory_space<vmem>>, vector<32x128xf32>
    %c0_3 = arith.constant 0 : index
    %c0_4 = arith.constant 0 : index
    %2 = vector.load %arg3[%c0_3, %c0_4] : memref<2x128xf32, #tpu.memory_space<vmem>>, vector<1x128xf32>
    %cst = arith.constant dense<0.000000e+00> : vector<32x128xf32>
    %3 = tpu.matmul %0, %1, %cst {dimension_numbers = #tpu.dot_dimension_numbers<[1], [0], [0], [1], [0, 0, 1, 1], [], []>} : vector<32x32xf32>, vector<32x128xf32>, vector<32x128xf32> -> vector<32x128xf32>
    %4 = vector.broadcast %2 : vector<1x128xf32> to vector<32x128xf32>
    %5 = arith.addf %3, %4 : vector<32x128xf32>
    %6 = math.tanh %5 : vector<32x128xf32>
    %c32 = arith.constant 32 : index
    %c0_5 = arith.constant 0 : index
    %7 = vector.load %arg2[%c32, %c0_5] : memref<160x128xf32, #tpu.memory_space<vmem>>, vector<128x128xf32>
    %c1 = arith.constant 1 : index
    %c0_6 = arith.constant 0 : index
    %8 = vector.load %arg3[%c1, %c0_6] : memref<2x128xf32, #tpu.memory_space<vmem>>, vector<1x128xf32>
    %cst_7 = arith.constant dense<0.000000e+00> : vector<32x128xf32>
    %9 = tpu.matmul %6, %7, %cst_7 {dimension_numbers = #tpu.dot_dimension_numbers<[1], [0], [0], [1], [0, 0, 1, 1], [], []>} : vector<32x128xf32>, vector<128x128xf32>, vector<32x128xf32> -> vector<32x128xf32>
    %10 = vector.broadcast %8 : vector<1x128xf32> to vector<32x128xf32>
    %11 = arith.addf %9, %10 : vector<32x128xf32>
    %12 = vector.extract_strided_slice %11 {offsets = [0, 8], sizes = [32, 1], strides = [1, 1]} : vector<32x128xf32> to vector<32x1xf32>
    %cst_8 = arith.constant dense<0.000000e+00> : vector<32xf32>
    %13 = vector.multi_reduction <add>, %11, %cst_8 [1] : vector<32x128xf32> to vector<32xf32>
    %14 = vector.shape_cast %13 : vector<32xf32> to vector<32x1xf32>
    %15 = arith.subf %14, %12 : vector<32x1xf32>
    %cst_9 = arith.constant 1.250000e-01 : f32
    %16 = vector.broadcast %cst_9 : f32 to vector<32x1xf32>
    %17 = arith.mulf %15, %16 : vector<32x1xf32>
    %18 = arith.subf %12, %17 : vector<32x1xf32>
    %19 = vector.broadcast %18 : vector<32x1xf32> to vector<32x128xf32>
    %20 = arith.addf %11, %19 : vector<32x128xf32>
    %c0_10 = arith.constant 0 : index
    %c0_11 = arith.constant 0 : index
    %21 = vector.load %arg4[%c0_10, %c0_11] : memref<32x128xf32, #tpu.memory_space<vmem>>, vector<32x128xf32>
    tpu.vector_store %arg4[%c0_10, %c0_11], %20 {strides = array<i32>} : memref<32x128xf32, #tpu.memory_space<vmem>>, vector<32x128xf32>,
    return
  }
  func.func @transform_0(%arg0: i32) -> (i32, i32) {
    %c0_i32 = arith.constant 0 : i32
    %c0_i32_0 = arith.constant 0 : i32
    return %arg0, %c0_i32 : i32, i32
  }
  func.func @transform_1(%arg0: i32) -> (i32, i32) {
    %c0_i32 = arith.constant 0 : i32
    %c0_i32_0 = arith.constant 0 : i32
    %c0_i32_1 = arith.constant 0 : i32
    return %c0_i32, %c0_i32_0 : i32, i32
  }
  func.func @transform_2(%arg0: i32) -> (i32, i32) {
    %c0_i32 = arith.constant 0 : i32
    %c0_i32_0 = arith.constant 0 : i32
    %c0_i32_1 = arith.constant 0 : i32
    return %c0_i32, %c0_i32_0 : i32, i32
  }
  func.func @transform_3(%arg0: i32) -> (i32, i32) {
    %c0_i32 = arith.constant 0 : i32
    %c0_i32_0 = arith.constant 0 : i32
    return %arg0, %c0_i32 : i32, i32
  }
}

module attributes {stable_mosaic.version = 11 : i64} {
  func.func @_dueling_kernel(%arg0: i32, %arg1: memref<32x32xf32, #tpu.memory_space<vmem>>, %arg2: memref<160x128xf32, #tpu.memory_space<vmem>>, %arg3: memref<2x128xf32, #tpu.memory_space<vmem>>, %arg4: memref<32x128xf32, #tpu.memory_space<vmem>>) attributes {dimension_semantics = [#tpu.dimension_semantics<parallel>], iteration_bounds = array<i64: 2>, scalar_prefetch = 0 : i64, scratch_operands = 0 : i64, tpu.core_type = #tpu.core_type<tc>, window_params = [{transform_indices = @transform_0, window_bounds = array<i64: 32, 32>}, {pipeline_mode = #tpu.pipeline_mode<synchronous>, transform_indices = @transform_1, window_bounds = array<i64: 160, 128>}, {pipeline_mode = #tpu.pipeline_mode<synchronous>, transform_indices = @transform_2, window_bounds = array<i64: 2, 128>}, {transform_indices = @transform_3, window_bounds = array<i64: 32, 128>}]} {
    %c0 = arith.constant 0 : index
    %c0_0 = arith.constant 0 : index
    %0 = vector.load %arg1[%c0, %c0_0] : memref<32x32xf32, #tpu.memory_space<vmem>>, vector<32x32xf32>
    %c0_1 = arith.constant 0 : index
    %c0_2 = arith.constant 0 : index
    %1 = vector.load %arg2[%c0_1, %c0_2] : memref<160x128xf32, #tpu.memory_space<vmem>>, vector<32x128xf32>
    %c0_3 = arith.constant 0 : index
    %c0_4 = arith.constant 0 : index
    %2 = vector.load %arg3[%c0_3, %c0_4] : memref<2x128xf32, #tpu.memory_space<vmem>>, vector<1x128xf32>
    %cst = arith.constant dense<0.000000e+00> : vector<32x128xf32>
    %3 = tpu.matmul %0, %1, %cst {dimension_numbers = #tpu.dot_dimension_numbers<[1], [0], [0], [1], [0, 0, 1, 1], [], []>} : vector<32x32xf32>, vector<32x128xf32>, vector<32x128xf32> -> vector<32x128xf32>
    %4 = vector.broadcast %2 : vector<1x128xf32> to vector<32x128xf32>
    %5 = arith.addf %3, %4 : vector<32x128xf32>
    %6 = math.tanh %5 : vector<32x128xf32>
    %c32 = arith.constant 32 : index
    %c0_5 = arith.constant 0 : index
    %7 = vector.load %arg2[%c32, %c0_5] : memref<160x128xf32, #tpu.memory_space<vmem>>, vector<128x128xf32>
    %c1 = arith.constant 1 : index
    %c0_6 = arith.constant 0 : index
    %8 = vector.load %arg3[%c1, %c0_6] : memref<2x128xf32, #tpu.memory_space<vmem>>, vector<1x128xf32>
    %cst_7 = arith.constant dense<0.000000e+00> : vector<32x128xf32>
    %9 = tpu.matmul %6, %7, %cst_7 {dimension_numbers = #tpu.dot_dimension_numbers<[1], [0], [0], [1], [0, 0, 1, 1], [], []>} : vector<32x128xf32>, vector<128x128xf32>, vector<32x128xf32> -> vector<32x128xf32>
    %10 = vector.broadcast %8 : vector<1x128xf32> to vector<32x128xf32>
    %11 = arith.addf %9, %10 : vector<32x128xf32>
    %12 = vector.extract_strided_slice %11 {offsets = [0, 8], sizes = [32, 1], strides = [1, 1]} : vector<32x128xf32> to vector<32x1xf32>
    %cst_8 = arith.constant dense<0.000000e+00> : vector<32xf32>
    %13 = vector.multi_reduction <add>, %11, %cst_8 [1] : vector<32x128xf32> to vector<32xf32>
    %14 = vector.shape_cast %13 : vector<32xf32> to vector<32x1xf32>
    %15 = arith.subf %14, %12 : vector<32x1xf32>
    %cst_9 = arith.constant 1.250000e-01 : f32
    %16 = vector.broadcast %cst_9 : f32 to vector<32x1xf32>
    %17 = arith.mulf %15, %16 : vector<32x1xf32>
    %18 = arith.subf %12, %17 : vector<32x1xf32>
    %19 = vector.broadcast %18 : vector<32x1xf32> to vector<32x128xf32>
    %20 = arith.addf %11, %19 : vector<32x128xf32>
    %c0_10 = arith.constant 0 : index
    %c0_11 = arith.constant 0 : index
    %21 = vector.load %arg4[%c0_10, %c0_11] : memref<32x128xf32, #tpu.memory_space<vmem>>, vector<32x128xf32>
    tpu.vector_store %arg4[%c0_10, %c0_11], %20 {strides = array<i32>} : memref<32x128xf32, #tpu.memory_space<vmem>>, vector<32x128xf32>,
    return
  }
  func.func @transform_0(%arg0: i32) -> (i32, i32) {
    %c0_i32 = arith.constant 0 : i32
    %c0_i32_0 = arith.constant 0 : i32
    return %arg0, %c0_i32 : i32, i32
  }
  func.func @transform_1(%arg0: i32) -> (i32, i32) {
    %c0_i32 = arith.constant 0 : i32
    %c0_i32_0 = arith.constant 0 : i32
    %c0_i32_1 = arith.constant 0 : i32
    return %c0_i32, %c0_i32_0 : i32, i32
  }
  func.func @transform_2(%arg0: i32) -> (i32, i32) {
    %c0_i32 = arith.constant 0 : i32
    %c0_i32_0 = arith.constant 0 : i32
    %c0_i32_1 = arith.constant 0 : i32
    return %c0_i32, %c0_i32_0 : i32, i32
  }
  func.func @transform_3(%arg0: i32) -> (i32, i32) {
    %c0_i32 = arith.constant 0 : i32
    %c0_i32_0 = arith.constant 0 : i32
    return %arg0, %c0_i32 : i32, i32
  }
}

</mosaic_0001>

<bundles_post_ra>
// kernel: tpu_custom_call.1
= control target key start
LH: loop header
LB: loop body
LE: loop exit
PB: predicated region body
PF: predicated region fallthrough
CT: control target
= control target key end

     0   :  { %8 = vsyncpa [#allocation3], 0  ;;  %s783_s0 = inlined_call_operand.vmem [shape: f32[64,32], index: 0, kind: input, shape index: {}]   ;;  %s784_s1 = inlined_call_operand.hbm [shape: f32[160,128], index: 1, kind: input, shape index: {}]   ;;  %s785_s2 = inlined_call_operand.vmem [shape: f32[2,128], index: 2, kind: input, shape index: {}]   ;;  %s786_s3 = inlined_call_operand.hbm [shape: f32[64,128], index: 3, kind: output, shape index: {}]  }
   0x1   :  { %9 = vsyncpa [#allocation4], 0 }
   0x2   :  { %11 = vsyncpa [#allocation4 + $0x1], 0  ;;  %s673_s12 = smov 0   ;;  %s675_s13 = smov 0  }
   0x3   :  { %s677_s14 = smov 0   ;;  %s679_s15 = smov 0  }
   0x4 LB: > { %s694_s16 = sadd.s32 4294967295, %s645_s15   ;;  %s430_s17 = sadd.s32 4294967294, %s645_s15   ;;  %s645_s15 = sphi %s679_s15, %s792_s15   ;;  %s641_s14 = sphi %s677_s14, %s791_s14   ;;  %s637_s13 = sphi %s675_s13, %s790_s13   ;;  %s633_s12 = sphi %s673_s12, %s789_s12  }
   0x5   : > { %s698_s18 = sadd.s32 1, %s645_s15   ;;  %s92_s19 = sadd.s32 1, %s641_s14 }
   0x6   : > { %s89_s20 = ssub.s32 %s645_s15, %s698_s18  ;;  %p102_p0 = scmp.ne.s32.totalorder %s641_s14, %s637_s13 }
   0x7   : > { %p90_p1 = scmp.eq.s32.totalorder %s89_s20, 0  ;;  %p103_p2 = scmp.eq.s32.totalorder %s694_s16, 1 }
   0x8   : > { %p108_p3 = scmp.ne.s32.totalorder %s637_s13, %s633_s12  ;;  %p109_p4 = scmp.eq.s32.totalorder %s430_s17, 1 }
   0x9   : > { %s709_s21 = scalar_select %p90_p1, %s641_s14, %s92_s19  }
   0xa   : > { %p711_p5 = por %p103_p2, %p102_p0  ;;  %p715_p6 = por %p109_p4, %p108_p3 }
   0xb   : > { %p431_p7 = scmp.ge.s32.totalorder %s645_s15, 1  ;;  %p116_p8 = scmp.lt.s32.totalorder %s645_s15, 3 }
   0xc   : > { %p495_p9 = scmp.eq.s32.totalorder %s694_s16, 0  ;;  %s127_s26 = sshll.u32 %s784_s1, 4  ;;  %s128_s26 = int_to_ptr.hbm [resolvable:$true] %s127_s26 }
   0xd   : > { %p117_p10 = pnand %p431_p7, %p116_p8  ;;  %s647_s27 = smov [#allocation2]  }
   0xe   : > { %s129_s28 = sshll.u32 %s647_s27, 4  ;;  %s648_s29 = smov 128   ;;  %s130_s28 = int_to_ptr.vmem [resolvable:$true] %s129_s28 }
   0xf   : > { %p487_p11 = pneg %p117_p10  ;;  %s649_s30 = smov 8  }
  0x10   : > { %157 = sbr.rel (%p117_p10) target bundleno = 566 (0x236), region = 32 }
  0x11   : > { %p488_p12 = pnand %p495_p9, %p487_p11 }
  0x13   : > { %490 = dma.hbm_to_vmem [thread:$0]  (!%p488_p12), %s128_s26, 2560, %s130_s28, [#allocation3], %s648_s29, %s648_s29, %s649_s30  }
  0x15   : > { %624 = dma.done.wait (%p495_p9), [#allocation3], 2560  }
  0x16   : > { %626 = vsyncadd (%p495_p9), [#allocation3], 4294964736  ;;  %s437_s4 = sshll.u32 %s694_s16, 2  ;;  %v196_v0 = vld [vmem:[#allocation2 + $0x18] sm:$0xff]  ;;  %v195_v1 = vld [vmem:[#allocation2 + $0x10] sm:$0xff]  ;;  %vm199_vm0 = vcmask 261120  }
  0x17   : > { %p183_p13 = scmp.lt.s32.totalorder %s437_s4, 7  ;;  %224 = vmatpush.msra.mxu0 %v196_v0  ;;  %v194_v2 = vld [vmem:[#allocation2 + $0x8] sm:$0xff]  ;;  %v260_v3 = vld [vmem:[#allocation2 + $0x98] sm:$0xff]  ;;  %v259_v4 = vld [vmem:[#allocation2 + $0x90] sm:$0xff]  ;;  %v650_v46 = vmov 8   ;;  %s179_s19 = sand.u32 1, %s637_s13  }
  0x18   : > { %263 = vmatpush.msra.mxu1 %v260_v3  ;;  %v193_v5 = vld [vmem:[#allocation2] sm:$0xff]  ;;  %v258_v6 = vld [vmem:[#allocation2 + $0x88] sm:$0xff]  ;;  %449 = vmatpush.msra.mxu2 %v260_v3  ;;  %v256_v9 = vld [vmem:[#allocation2 + $0x78] sm:$0xff]  ;;  %s436_s20 = sshll.u32 %s179_s19, 5  ;;  %s448_s25 = sshll.u32 %s694_s16, 5 }
  0x19   : > { %s794_s4 = smov (!%p183_p13, %s437_s4), 7  ;;  %225 = vmatpush.msra.mxu0 %v195_v1  ;;  %450 = vmatpush.msra.mxu3 %v260_v3  ;;  %v257_v8 = vld [vmem:[#allocation2 + $0x80] sm:$0xff]  ;;  %v255_v10 = vld [vmem:[#allocation2 + $0x70] sm:$0xff]  ;;  %v254_v11 = vld [vmem:[#allocation2 + $0x68] sm:$0xff]  ;;  %s181_s24 = scalar_lea.vmem [#allocation5], %s436_s20 }
  0x1a   : > { %s438_s5 = sshll.u32 %s794_s4, 3  ;;  %264 = vmatpush.msra.mxu1 %v259_v4  ;;  %451 = vmatpush.msra.mxu2 %v259_v4  ;;  %v253_v13 = vld [vmem:[#allocation2 + $0x60] sm:$0xff]  ;;  %v252_v14 = vld [vmem:[#allocation2 + $0x58] sm:$0xff]  ;;  %v251_v15 = vld [vmem:[#allocation2 + $0x50] sm:$0xff]  ;;  %s352_s28 = scalar_lea.hbm %s786_s3, %s448_s25 }
  0x1b   : > { %s735_s8 = scalar_lea.vmem %s783_s0, %s438_s5  ;;  %226 = vmatpush.msra.mxu0 %v194_v2  ;;  %452 = vmatpush.msra.mxu3 %v259_v4  ;;  %v250_v16 = vld [vmem:[#allocation2 + $0x48] sm:$0xff]  ;;  %v249_v19 = vld [vmem:[#allocation2 + $0x40] sm:$0xff]  ;;  %v248_v20 = vld [vmem:[#allocation2 + $0x38] sm:$0xff]  ;;  %s353_s29 = sshll.u32 %s181_s24, 4  ;;  %s354_s29 = int_to_ptr.vmem [resolvable:$true] %s353_s29 }
  0x1c   : > { %v189_v7 = vld [vmem:[%s735_s8] sm:$0xff]  ;;  %265 = vmatpush.msra.mxu1 %v258_v6  ;;  %453 = vmatpush.msra.mxu2 %v258_v6  ;;  %v190_v12 = vld [vmem:[%s735_s8 + $0x8] sm:$0xff]  ;;  %v191_v17 = vld [vmem:[%s735_s8 + $0x10] sm:$0xff]  ;;  %s355_s30 = sshll.u32 %s352_s28, 4  ;;  %s341_s4 = scalar_lea.sflag [#allocation4], %s179_s19  ;;  %s356_s30 = int_to_ptr.hbm [resolvable:$true] %s355_s30 }
  0x1d   : > { %227 = vmatpush.msra.mxu0 %v193_v5  ;;  %454 = vmatpush.msra.mxu3 %v258_v6  ;;  %v192_v18 = vld [vmem:[%s735_s8 + $0x18] sm:$0xff]  ;;  %v247_v21 = vld [vmem:[#allocation2 + $0x30] sm:$0xff]  ;;  %v246_v22 = vld [vmem:[#allocation2 + $0x28] sm:$0xff]  ;;  %s593_s5 = sshra.s32 %s356_s30, 4  ;;  %s599_s8 = scalar_lea.hbm %s786_s3, 64  ;;  %s594_s5 = int_to_ptr.hbm [resolvable:$true] %s593_s5 }
  0x1e   : > { %439 = vmatmul.msk.f32.vlgmr.msra.gmra.mxu0 %vm199_vm0, %v189_v7  ;;  %266 = vmatpush.msra.mxu1 %v257_v8  ;;  %v245_v23 = vld [vmem:[#allocation2 + $0x20] sm:$0xff]  ;;  %s595_s6 = scalar_lea.hbm %s594_s5, 32  ;;  %p600_p3 = scmp.lt.s32.totalorder %s594_s5, %s786_s3 }
  0x1f   : > { %455 = vmatpush.msra.mxu2 %v257_v8  ;;  %456 = vmatpush.msra.mxu3 %v257_v8  ;;  %v539_v24 = vld [vmem:[%s785_s2] ss:$0 sm:$0xff]  ;;  %v540_v37 = vld [vmem:[%s785_s2 + $0x1] ss:$0 sm:$0xff]  ;;  %p596_p0 = scmp.ne.s32.totalorder %s594_s5, %s595_s6  ;;  %p601_p4 = scmp.lt.s32.totalorder %s599_s8, %s595_s6 }
  0x20   : > { %267 = vmatpush.msra.mxu1 %v256_v9  ;;  %536 = vset.pattern.permute.xlu2 %v650_v46 }
  0x21   : > { %457 = vmatpush.msra.mxu2 %v256_v9  ;;  %458 = vmatpush.msra.mxu3 %v256_v9  ;;  %p597_p1 = pnand %p596_p0, %p711_p5  ;;  %p602_p7 = por %p601_p4, %p600_p3 }
  0x22   : > { %268 = vmatpush.msra.mxu1 %v255_v10  ;;  %537 = vset.pattern.permute.xlu0 %v650_v46 }
  0x23   : > { %459 = vmatpush.msra.mxu2 %v255_v10  ;;  %460 = vmatpush.msra.mxu3 %v255_v10  ;;  %p598_p2 = pneg %p597_p1 }
  0x24   : > { %269 = vmatpush.msra.mxu1 %v254_v11  ;;  %538 = vset.pattern.permute.xlu1 %v650_v46 }
  0x25   : > { %461 = vmatpush.msra.mxu2 %v254_v11  ;;  %462 = vmatpush.msra.mxu3 %v254_v11  ;;  %p603_p8 = pnand %p602_p7, %p598_p2 }
  0x26   : > { %440 = vmatmul.msk.f32.gmra.mxu0 %vm199_vm0, %v190_v12  ;;  %270 = vmatpush.msra.mxu1 %v253_v13 }
  0x27   : > { %463 = vmatpush.msra.mxu2 %v253_v13  ;;  %464 = vmatpush.msra.mxu3 %v253_v13 }
  0x28   : > { %271 = vmatpush.msra.mxu1 %v252_v14 }
  0x29   : > { %465 = vmatpush.msra.mxu2 %v252_v14  ;;  %466 = vmatpush.msra.mxu3 %v252_v14 }
  0x2a   : > { %272 = vmatpush.msra.mxu1 %v251_v15 }
  0x2b   : > { %467 = vmatpush.msra.mxu2 %v251_v15  ;;  %468 = vmatpush.msra.mxu3 %v251_v15 }
  0x2c   : > { %273 = vmatpush.msra.mxu1 %v250_v16 }
  0x2d   : > { %469 = vmatpush.msra.mxu2 %v250_v16  ;;  %470 = vmatpush.msra.mxu3 %v250_v16 }
  0x2e   : > { %441 = vmatmul.msk.f32.gmra.mxu0 %vm199_vm0, %v191_v17  ;;  %274 = vmatpush.msra.mxu1 %v249_v19 }
  0x2f   : > { %471 = vmatpush.msra.mxu2 %v249_v19  ;;  %472 = vmatpush.msra.mxu3 %v249_v19 }
  0x30   : > { %275 = vmatpush.msra.mxu1 %v248_v20 }
  0x31   : > { %473 = vmatpush.msra.mxu2 %v248_v20  ;;  %474 = vmatpush.msra.mxu3 %v248_v20 }
  0x32   : > { %276 = vmatpush.msra.mxu1 %v247_v21 }
  0x33   : > { %475 = vmatpush.msra.mxu2 %v247_v21  ;;  %476 = vmatpush.msra.mxu3 %v247_v21 }
  0x34   : > { %277 = vmatpush.msra.mxu1 %v246_v22 }
  0x35   : > { %477 = vmatpush.msra.mxu2 %v246_v22  ;;  %478 = vmatpush.msra.mxu3 %v246_v22 }
  0x36   : > { %442 = vmatmul.msk.f32.gmra.mxu0 %vm199_vm0, %v192_v18  ;;  %278 = vmatpush.msra.mxu1 %v245_v23 }
  0x37   : > { %479 = vmatpush.msra.mxu2 %v245_v23  ;;  %480 = vmatpush.msra.mxu3 %v245_v23 }
  0x9b   : > { %v229_v25 = vpop.f32.mrf.mxu0 }
  0x9c   : > { %v230_v26 = vadd.f32 %v539_v24, %v229_v25 }
  0x9e   : > { %541 = vtanh.f32 %v230_v26 }
  0xa3   : > { %v232_v27 = vpop.f32.mrf.mxu0 }
  0xa4   : > { %v542_v28 = vpop.eup %541  ;;  %v233_v29 = vadd.f32 %v539_v24, %v232_v27 }
  0xa5   : > { %279 = vmatmul.f32.vlgmr.msra.gmra.mxu1 %v542_v28 }
  0xa6   : > { %543 = vtanh.f32 %v233_v29 }
  0xab   : > { %v235_v30 = vpop.f32.mrf.mxu0 }
  0xac   : > { %v544_v31 = vpop.eup %543  ;;  %v236_v32 = vadd.f32 %v539_v24, %v235_v30 }
  0xad   : > { %282 = vmatmul.f32.vlgmr.msra.gmra.mxu2 %v544_v31 }
  0xae   : > { %545 = vtanh.f32 %v236_v32 }
  0xb3   : > { %v238_v33 = vpop.f32.mrf.mxu0 }
  0xb4   : > { %v546_v34 = vpop.eup %545  ;;  %v239_v35 = vadd.f32 %v539_v24, %v238_v33 }
  0xb5   : > { %285 = vmatmul.f32.vlgmr.msra.gmra.mxu3 %v546_v34 }
  0xb6   : > { %547 = vtanh.f32 %v239_v35 }
  0xbc   : > { %v548_v36 = vpop.eup %547 }
  0xbd   : > { %288 = vmatmul.f32.gmra.mxu3 %v548_v36 }
 0x122   : > { %v280_v38 = vpop.f32.mrf.mxu1 }
 0x123   : > { %v281_v39 = vadd.f32 %v540_v37, %v280_v38 }
 0x125   : > { %292 = vadd.xlane.f32.xlu0 %v281_v39 }
 0x130   : > { %v283_v40 = vpop.f32.mrf.mxu2 }
 0x131   : > { %v284_v41 = vadd.f32 %v540_v37, %v283_v40 }
 0x133   : > { %294 = vadd.xlane.f32.xlu0 %v284_v41 }
 0x138   : > { %v286_v42 = vpop.f32.mrf.mxu3 }
 0x139   : > { %v287_v43 = vadd.f32 %v540_v37, %v286_v42 }
 0x13b   : > { %296 = vadd.xlane.f32.xlu1 %v287_v43 }
 0x140   : > { %v289_v44 = vpop.f32.mrf.mxu3 }
 0x141   : > { %v290_v45 = vadd.f32 %v540_v37, %v289_v44 }
 0x143   : > { %298 = vadd.xlane.f32.xlu1 %v290_v45 }
 0x198   : > { %v293_v47 = vpop.xlane.xlu0 %292 }
 0x199   : > { %v300_v48 = vsub.f32 %v293_v47, %v281_v39 }
 0x19b   : > { %v304_v49 = vmul.f32 0.125, %v300_v48 }
 0x19d   : > { %v308_v50 = vsub.f32 %v281_v39, %v304_v49 }
 0x19f   : > { %314 = vperm.xlu2 %536, %v308_v50  }
 0x1a6   : > { %v295_v51 = vpop.xlane.xlu0 %294 }
 0x1a7   : > { %v301_v52 = vsub.f32 %v295_v51, %v284_v41 }
 0x1a9   : > { %v305_v53 = vmul.f32 0.125, %v301_v52 }
 0x1ab   : > { %v309_v54 = vsub.f32 %v284_v41, %v305_v53 }
 0x1ad   : > { %319 = vperm.xlu2 %536, %v309_v54  }
 0x1ae   : > { %v297_v55 = vpop.xlane.xlu1 %296 }
 0x1af   : > { %v302_v56 = vsub.f32 %v297_v55, %v287_v43 }
 0x1b1   : > { %v306_v57 = vmul.f32 0.125, %v302_v56 }
 0x1b3   : > { %v310_v58 = vsub.f32 %v287_v43, %v306_v57 }
 0x1b5   : > { %324 = vperm.xlu0 %537, %v310_v58  }
 0x1b6   : > { %v299_v59 = vpop.xlane.xlu1 %298 }
 0x1b7   : > { %v303_v60 = vsub.f32 %v299_v59, %v290_v45 }
 0x1b9   : > { %v307_v61 = vmul.f32 0.125, %v303_v60 }
 0x1bb   : > { %v311_v62 = vsub.f32 %v290_v45, %v307_v61 }
 0x1bd   : > { %329 = vperm.xlu1 %538, %v311_v62  }
 0x1f9   : > { %v315_v63 = vpop.permute.xlu2 %314 }
 0x1fa   : > { %v332_v0 = vadd.f32 %v315_v63, %v281_v39 }
 0x1fc   : > { %336 = vst [vmem:[%s181_s24] sm:$0xff] %v332_v0 }
 0x207   : > { %v320_v1 = vpop.permute.xlu2 %319 }
 0x208   : > { %v333_v2 = vadd.f32 %v320_v1, %v284_v41 }
 0x20a   : > { %337 = vst [vmem:[%s181_s24 + $0x8] sm:$0xff] %v333_v2 }
 0x227   : > { %v325_v3 = vpop.permute.xlu0 %324 }
 0x228   : > { %v334_v4 = vadd.f32 %v325_v3, %v287_v43 }
 0x22a   : > { %338 = vst [vmem:[%s181_s24 + $0x10] sm:$0xff] %v334_v4 }
 0x22f   : > { %v330_v5 = vpop.permute.xlu1 %329 }
 0x230   : > { %v335_v6 = vadd.f32 %v330_v5, %v290_v45 }
 0x232   : > { %339 = vst [vmem:[%s181_s24 + $0x18] sm:$0xff] %v335_v6 }
 0x233   : > { %606 = shalt.err (!%p603_p8)
}
 0x234   : > { %s651_s11 = smov 128   ;;  %s652_s17 = smov 8  }
 0x235   : > { %485 = dma.vmem_to_hbm [thread:$0]  (%p711_p5), %s354_s29, 512, %s356_s30, %s341_s4, %s651_s11, %s651_s11, %s652_s17  }
 0x236 PF: > { %p497_p9 = scmp.ge.s32.totalorder %s645_s15, 2  ;;  %s370_s19 = sand.u32 1, %s633_s12  }
 0x237   : > { %s371_s20 = scalar_lea.sflag [#allocation4], %s370_s19 }
 0x238   : > { %p492_p10 = pnand %p497_p9, %p715_p6 }
 0x23a   : > { %p493_p11 = pneg %p492_p10 }
 0x23c   : > { %628 = dma.done.wait (%p493_p11), %s371_s20, 512  }
 0x23d   : > { %630 = vsyncadd (%p493_p11), %s371_s20, 4294966784  ;;  %p14_p12 = scmp.ge.s32.totalorder %s698_s18, 4   ;;  %s789_s12 = smov %s637_s13 }
 0x23e   : > { %s790_s13 = smov %s641_s14  ;;  %s791_s14 = smov %s709_s21 }
 0x23f   : > { %s792_s15 = smov %s698_s18  ;;  %16 = sbr.rel (!%p14_p12) target bundleno = 4 (0x4), region = 72 }
 0x244   :  { %377 = vsyncpa [#allocation3], 1 }
 0x245   :  { %379 = vsyncpa [#allocation3 + $0x1], 1 }
 0x246   :  { %380 = vsyncpa [#allocation4], 1 }
 0x247   :  { %382 = vsyncpa [#allocation4 + $0x1], 1 }

// kernel: tpu_custom_call.1
= control target key start
LH: loop header
LB: loop body
LE: loop exit
PB: predicated region body
PF: predicated region fallthrough
CT: control target
= control target key end

     0   :  { %8 = vsyncpa [#allocation3], 0  ;;  %s783_s0 = inlined_call_operand.vmem [shape: f32[64,32], index: 0, kind: input, shape index: {}]   ;;  %s784_s1 = inlined_call_operand.hbm [shape: f32[160,128], index: 1, kind: input, shape index: {}]   ;;  %s785_s2 = inlined_call_operand.vmem [shape: f32[2,128], index: 2, kind: input, shape index: {}]   ;;  %s786_s3 = inlined_call_operand.hbm [shape: f32[64,128], index: 3, kind: output, shape index: {}]  }
   0x1   :  { %9 = vsyncpa [#allocation4], 0 }
   0x2   :  { %11 = vsyncpa [#allocation4 + $0x1], 0  ;;  %s673_s12 = smov 0   ;;  %s675_s13 = smov 0  }
   0x3   :  { %s677_s14 = smov 0   ;;  %s679_s15 = smov 0  }
   0x4 LB: > { %s694_s16 = sadd.s32 4294967295, %s645_s15   ;;  %s430_s17 = sadd.s32 4294967294, %s645_s15   ;;  %s645_s15 = sphi %s679_s15, %s792_s15   ;;  %s641_s14 = sphi %s677_s14, %s791_s14   ;;  %s637_s13 = sphi %s675_s13, %s790_s13   ;;  %s633_s12 = sphi %s673_s12, %s789_s12  }
   0x5   : > { %s698_s18 = sadd.s32 1, %s645_s15   ;;  %s92_s19 = sadd.s32 1, %s641_s14 }
   0x6   : > { %s89_s20 = ssub.s32 %s645_s15, %s698_s18  ;;  %p102_p0 = scmp.ne.s32.totalorder %s641_s14, %s637_s13 }
   0x7   : > { %p90_p1 = scmp.eq.s32.totalorder %s89_s20, 0  ;;  %p103_p2 = scmp.eq.s32.totalorder %s694_s16, 1 }
   0x8   : > { %p108_p3 = scmp.ne.s32.totalorder %s637_s13, %s633_s12  ;;  %p109_p4 = scmp.eq.s32.totalorder %s430_s17, 1 }
   0x9   : > { %s709_s21 = scalar_select %p90_p1, %s641_s14, %s92_s19  }
   0xa   : > { %p711_p5 = por %p103_p2, %p102_p0  ;;  %p715_p6 = por %p109_p4, %p108_p3 }
   0xb   : > { %p431_p7 = scmp.ge.s32.totalorder %s645_s15, 1  ;;  %p116_p8 = scmp.lt.s32.totalorder %s645_s15, 3 }
   0xc   : > { %p495_p9 = scmp.eq.s32.totalorder %s694_s16, 0  ;;  %s127_s26 = sshll.u32 %s784_s1, 4  ;;  %s128_s26 = int_to_ptr.hbm [resolvable:$true] %s127_s26 }
   0xd   : > { %p117_p10 = pnand %p431_p7, %p116_p8  ;;  %s647_s27 = smov [#allocation2]  }
   0xe   : > { %s129_s28 = sshll.u32 %s647_s27, 4  ;;  %s648_s29 = smov 128   ;;  %s130_s28 = int_to_ptr.vmem [resolvable:$true] %s129_s28 }
   0xf   : > { %p487_p11 = pneg %p117_p10  ;;  %s649_s30 = smov 8  }
  0x10   : > { %157 = sbr.rel (%p117_p10) target bundleno = 566 (0x236), region = 32 }
  0x11   : > { %p488_p12 = pnand %p495_p9, %p487_p11 }
  0x13   : > { %490 = dma.hbm_to_vmem [thread:$0]  (!%p488_p12), %s128_s26, 2560, %s130_s28, [#allocation3], %s648_s29, %s648_s29, %s649_s30  }
  0x15   : > { %624 = dma.done.wait (%p495_p9), [#allocation3], 2560  }
  0x16   : > { %626 = vsyncadd (%p495_p9), [#allocation3], 4294964736  ;;  %s437_s4 = sshll.u32 %s694_s16, 2  ;;  %v196_v0 = vld [vmem:[#allocation2 + $0x18] sm:$0xff]  ;;  %v195_v1 = vld [vmem:[#allocation2 + $0x10] sm:$0xff]  ;;  %vm199_vm0 = vcmask 261120  }
  0x17   : > { %p183_p13 = scmp.lt.s32.totalorder %s437_s4, 7  ;;  %224 = vmatpush.msra.mxu0 %v196_v0  ;;  %v194_v2 = vld [vmem:[#allocation2 + $0x8] sm:$0xff]  ;;  %v260_v3 = vld [vmem:[#allocation2 + $0x98] sm:$0xff]  ;;  %v259_v4 = vld [vmem:[#allocation2 + $0x90] sm:$0xff]  ;;  %v650_v46 = vmov 8   ;;  %s179_s19 = sand.u32 1, %s637_s13  }
  0x18   : > { %263 = vmatpush.msra.mxu1 %v260_v3  ;;  %v193_v5 = vld [vmem:[#allocation2] sm:$0xff]  ;;  %v258_v6 = vld [vmem:[#allocation2 + $0x88] sm:$0xff]  ;;  %449 = vmatpush.msra.mxu2 %v260_v3  ;;  %v256_v9 = vld [vmem:[#allocation2 + $0x78] sm:$0xff]  ;;  %s436_s20 = sshll.u32 %s179_s19, 5  ;;  %s448_s25 = sshll.u32 %s694_s16, 5 }
  0x19   : > { %s794_s4 = smov (!%p183_p13, %s437_s4), 7  ;;  %225 = vmatpush.msra.mxu0 %v195_v1  ;;  %450 = vmatpush.msra.mxu3 %v260_v3  ;;  %v257_v8 = vld [vmem:[#allocation2 + $0x80] sm:$0xff]  ;;  %v255_v10 = vld [vmem:[#allocation2 + $0x70] sm:$0xff]  ;;  %v254_v11 = vld [vmem:[#allocation2 + $0x68] sm:$0xff]  ;;  %s181_s24 = scalar_lea.vmem [#allocation5], %s436_s20 }
  0x1a   : > { %s438_s5 = sshll.u32 %s794_s4, 3  ;;  %264 = vmatpush.msra.mxu1 %v259_v4  ;;  %451 = vmatpush.msra.mxu2 %v259_v4  ;;  %v253_v13 = vld [vmem:[#allocation2 + $0x60] sm:$0xff]  ;;  %v252_v14 = vld [vmem:[#allocation2 + $0x58] sm:$0xff]  ;;  %v251_v15 = vld [vmem:[#allocation2 + $0x50] sm:$0xff]  ;;  %s352_s28 = scalar_lea.hbm %s786_s3, %s448_s25 }
  0x1b   : > { %s735_s8 = scalar_lea.vmem %s783_s0, %s438_s5  ;;  %226 = vmatpush.msra.mxu0 %v194_v2  ;;  %452 = vmatpush.msra.mxu3 %v259_v4  ;;  %v250_v16 = vld [vmem:[#allocation2 + $0x48] sm:$0xff]  ;;  %v249_v19 = vld [vmem:[#allocation2 + $0x40] sm:$0xff]  ;;  %v248_v20 = vld [vmem:[#allocation2 + $0x38] sm:$0xff]  ;;  %s353_s29 = sshll.u32 %s181_s24, 4  ;;  %s354_s29 = int_to_ptr.vmem [resolvable:$true] %s353_s29 }
  0x1c   : > { %v189_v7 = vld [vmem:[%s735_s8] sm:$0xff]  ;;  %265 = vmatpush.msra.mxu1 %v258_v6  ;;  %453 = vmatpush.msra.mxu2 %v258_v6  ;;  %v190_v12 = vld [vmem:[%s735_s8 + $0x8] sm:$0xff]  ;;  %v191_v17 = vld [vmem:[%s735_s8 + $0x10] sm:$0xff]  ;;  %s355_s30 = sshll.u32 %s352_s28, 4  ;;  %s341_s4 = scalar_lea.sflag [#allocation4], %s179_s19  ;;  %s356_s30 = int_to_ptr.hbm [resolvable:$true] %s355_s30 }
  0x1d   : > { %227 = vmatpush.msra.mxu0 %v193_v5  ;;  %454 = vmatpush.msra.mxu3 %v258_v6  ;;  %v192_v18 = vld [vmem:[%s735_s8 + $0x18] sm:$0xff]  ;;  %v247_v21 = vld [vmem:[#allocation2 + $0x30] sm:$0xff]  ;;  %v246_v22 = vld [vmem:[#allocation2 + $0x28] sm:$0xff]  ;;  %s593_s5 = sshra.s32 %s356_s30, 4  ;;  %s599_s8 = scalar_lea.hbm %s786_s3, 64  ;;  %s594_s5 = int_to_ptr.hbm [resolvable:$true] %s593_s5 }
  0x1e   : > { %439 = vmatmul.msk.f32.vlgmr.msra.gmra.mxu0 %vm199_vm0, %v189_v7  ;;  %266 = vmatpush.msra.mxu1 %v257_v8  ;;  %v245_v23 = vld [vmem:[#allocation2 + $0x20] sm:$0xff]  ;;  %s595_s6 = scalar_lea.hbm %s594_s5, 32  ;;  %p600_p3 = scmp.lt.s32.totalorder %s594_s5, %s786_s3 }
  0x1f   : > { %455 = vmatpush.msra.mxu2 %v257_v8  ;;  %456 = vmatpush.msra.mxu3 %v257_v8  ;;  %v539_v24 = vld [vmem:[%s785_s2] ss:$0 sm:$0xff]  ;;  %v540_v37 = vld [vmem:[%s785_s2 + $0x1] ss:$0 sm:$0xff]  ;;  %p596_p0 = scmp.ne.s32.totalorder %s594_s5, %s595_s6  ;;  %p601_p4 = scmp.lt.s32.totalorder %s599_s8, %s595_s6 }
  0x20   : > { %267 = vmatpush.msra.mxu1 %v256_v9  ;;  %536 = vset.pattern.permute.xlu2 %v650_v46 }
  0x21   : > { %457 = vmatpush.msra.mxu2 %v256_v9  ;;  %458 = vmatpush.msra.mxu3 %v256_v9  ;;  %p597_p1 = pnand %p596_p0, %p711_p5  ;;  %p602_p7 = por %p601_p4, %p600_p3 }
  0x22   : > { %268 = vmatpush.msra.mxu1 %v255_v10  ;;  %537 = vset.pattern.permute.xlu0 %v650_v46 }
  0x23   : > { %459 = vmatpush.msra.mxu2 %v255_v10  ;;  %460 = vmatpush.msra.mxu3 %v255_v10  ;;  %p598_p2 = pneg %p597_p1 }
  0x24   : > { %269 = vmatpush.msra.mxu1 %v254_v11  ;;  %538 = vset.pattern.permute.xlu1 %v650_v46 }
  0x25   : > { %461 = vmatpush.msra.mxu2 %v254_v11  ;;  %462 = vmatpush.msra.mxu3 %v254_v11  ;;  %p603_p8 = pnand %p602_p7, %p598_p2 }
  0x26   : > { %440 = vmatmul.msk.f32.gmra.mxu0 %vm199_vm0, %v190_v12  ;;  %270 = vmatpush.msra.mxu1 %v253_v13 }
  0x27   : > { %463 = vmatpush.msra.mxu2 %v253_v13  ;;  %464 = vmatpush.msra.mxu3 %v253_v13 }
  0x28   : > { %271 = vmatpush.msra.mxu1 %v252_v14 }
  0x29   : > { %465 = vmatpush.msra.mxu2 %v252_v14  ;;  %466 = vmatpush.msra.mxu3 %v252_v14 }
  0x2a   : > { %272 = vmatpush.msra.mxu1 %v251_v15 }
  0x2b   : > { %467 = vmatpush.msra.mxu2 %v251_v15  ;;  %468 = vmatpush.msra.mxu3 %v251_v15 }
  0x2c   : > { %273 = vmatpush.msra.mxu1 %v250_v16 }
  0x2d   : > { %469 = vmatpush.msra.mxu2 %v250_v16  ;;  %470 = vmatpush.msra.mxu3 %v250_v16 }
  0x2e   : > { %441 = vmatmul.msk.f32.gmra.mxu0 %vm199_vm0, %v191_v17  ;;  %274 = vmatpush.msra.mxu1 %v249_v19 }
  0x2f   : > { %471 = vmatpush.msra.mxu2 %v249_v19  ;;  %472 = vmatpush.msra.mxu3 %v249_v19 }
  0x30   : > { %275 = vmatpush.msra.mxu1 %v248_v20 }
  0x31   : > { %473 = vmatpush.msra.mxu2 %v248_v20  ;;  %474 = vmatpush.msra.mxu3 %v248_v20 }
  0x32   : > { %276 = vmatpush.msra.mxu1 %v247_v21 }
  0x33   : > { %475 = vmatpush.msra.mxu2 %v247_v21  ;;  %476 = vmatpush.msra.mxu3 %v247_v21 }
  0x34   : > { %277 = vmatpush.msra.mxu1 %v246_v22 }
  0x35   : > { %477 = vmatpush.msra.mxu2 %v246_v22  ;;  %478 = vmatpush.msra.mxu3 %v246_v22 }
  0x36   : > { %442 = vmatmul.msk.f32.gmra.mxu0 %vm199_vm0, %v192_v18  ;;  %278 = vmatpush.msra.mxu1 %v245_v23 }
  0x37   : > { %479 = vmatpush.msra.mxu2 %v245_v23  ;;  %480 = vmatpush.msra.mxu3 %v245_v23 }
  0x9b   : > { %v229_v25 = vpop.f32.mrf.mxu0 }
  0x9c   : > { %v230_v26 = vadd.f32 %v539_v24, %v229_v25 }
  0x9e   : > { %541 = vtanh.f32 %v230_v26 }
  0xa3   : > { %v232_v27 = vpop.f32.mrf.mxu0 }
  0xa4   : > { %v542_v28 = vpop.eup %541  ;;  %v233_v29 = vadd.f32 %v539_v24, %v232_v27 }
  0xa5   : > { %279 = vmatmul.f32.vlgmr.msra.gmra.mxu1 %v542_v28 }
  0xa6   : > { %543 = vtanh.f32 %v233_v29 }
  0xab   : > { %v235_v30 = vpop.f32.mrf.mxu0 }
  0xac   : > { %v544_v31 = vpop.eup %543  ;;  %v236_v32 = vadd.f32 %v539_v24, %v235_v30 }
  0xad   : > { %282 = vmatmul.f32.vlgmr.msra.gmra.mxu2 %v544_v31 }
  0xae   : > { %545 = vtanh.f32 %v236_v32 }
  0xb3   : > { %v238_v33 = vpop.f32.mrf.mxu0 }
  0xb4   : > { %v546_v34 = vpop.eup %545  ;;  %v239_v35 = vadd.f32 %v539_v24, %v238_v33 }
  0xb5   : > { %285 = vmatmul.f32.vlgmr.msra.gmra.mxu3 %v546_v34 }
  0xb6   : > { %547 = vtanh.f32 %v239_v35 }
  0xbc   : > { %v548_v36 = vpop.eup %547 }
  0xbd   : > { %288 = vmatmul.f32.gmra.mxu3 %v548_v36 }
 0x122   : > { %v280_v38 = vpop.f32.mrf.mxu1 }
 0x123   : > { %v281_v39 = vadd.f32 %v540_v37, %v280_v38 }
 0x125   : > { %292 = vadd.xlane.f32.xlu0 %v281_v39 }
 0x130   : > { %v283_v40 = vpop.f32.mrf.mxu2 }
 0x131   : > { %v284_v41 = vadd.f32 %v540_v37, %v283_v40 }
 0x133   : > { %294 = vadd.xlane.f32.xlu0 %v284_v41 }
 0x138   : > { %v286_v42 = vpop.f32.mrf.mxu3 }
 0x139   : > { %v287_v43 = vadd.f32 %v540_v37, %v286_v42 }
 0x13b   : > { %296 = vadd.xlane.f32.xlu1 %v287_v43 }
 0x140   : > { %v289_v44 = vpop.f32.mrf.mxu3 }
 0x141   : > { %v290_v45 = vadd.f32 %v540_v37, %v289_v44 }
 0x143   : > { %298 = vadd.xlane.f32.xlu1 %v290_v45 }
 0x198   : > { %v293_v47 = vpop.xlane.xlu0 %292 }
 0x199   : > { %v300_v48 = vsub.f32 %v293_v47, %v281_v39 }
 0x19b   : > { %v304_v49 = vmul.f32 0.125, %v300_v48 }
 0x19d   : > { %v308_v50 = vsub.f32 %v281_v39, %v304_v49 }
 0x19f   : > { %314 = vperm.xlu2 %536, %v308_v50  }
 0x1a6   : > { %v295_v51 = vpop.xlane.xlu0 %294 }
 0x1a7   : > { %v301_v52 = vsub.f32 %v295_v51, %v284_v41 }
 0x1a9   : > { %v305_v53 = vmul.f32 0.125, %v301_v52 }
 0x1ab   : > { %v309_v54 = vsub.f32 %v284_v41, %v305_v53 }
 0x1ad   : > { %319 = vperm.xlu2 %536, %v309_v54  }
 0x1ae   : > { %v297_v55 = vpop.xlane.xlu1 %296 }
 0x1af   : > { %v302_v56 = vsub.f32 %v297_v55, %v287_v43 }
 0x1b1   : > { %v306_v57 = vmul.f32 0.125, %v302_v56 }
 0x1b3   : > { %v310_v58 = vsub.f32 %v287_v43, %v306_v57 }
 0x1b5   : > { %324 = vperm.xlu0 %537, %v310_v58  }
 0x1b6   : > { %v299_v59 = vpop.xlane.xlu1 %298 }
 0x1b7   : > { %v303_v60 = vsub.f32 %v299_v59, %v290_v45 }
 0x1b9   : > { %v307_v61 = vmul.f32 0.125, %v303_v60 }
 0x1bb   : > { %v311_v62 = vsub.f32 %v290_v45, %v307_v61 }
 0x1bd   : > { %329 = vperm.xlu1 %538, %v311_v62  }
 0x1f9   : > { %v315_v63 = vpop.permute.xlu2 %314 }
 0x1fa   : > { %v332_v0 = vadd.f32 %v315_v63, %v281_v39 }
 0x1fc   : > { %336 = vst [vmem:[%s181_s24] sm:$0xff] %v332_v0 }
 0x207   : > { %v320_v1 = vpop.permute.xlu2 %319 }
 0x208   : > { %v333_v2 = vadd.f32 %v320_v1, %v284_v41 }
 0x20a   : > { %337 = vst [vmem:[%s181_s24 + $0x8] sm:$0xff] %v333_v2 }
 0x227   : > { %v325_v3 = vpop.permute.xlu0 %324 }
 0x228   : > { %v334_v4 = vadd.f32 %v325_v3, %v287_v43 }
 0x22a   : > { %338 = vst [vmem:[%s181_s24 + $0x10] sm:$0xff] %v334_v4 }
 0x22f   : > { %v330_v5 = vpop.permute.xlu1 %329 }
 0x230   : > { %v335_v6 = vadd.f32 %v330_v5, %v290_v45 }
 0x232   : > { %339 = vst [vmem:[%s181_s24 + $0x18] sm:$0xff] %v335_v6 }
 0x233   : > { %606 = shalt.err (!%p603_p8)
}
 0x234   : > { %s651_s11 = smov 128   ;;  %s652_s17 = smov 8  }
 0x235   : > { %485 = dma.vmem_to_hbm [thread:$0]  (%p711_p5), %s354_s29, 512, %s356_s30, %s341_s4, %s651_s11, %s651_s11, %s652_s17  }
 0x236 PF: > { %p497_p9 = scmp.ge.s32.totalorder %s645_s15, 2  ;;  %s370_s19 = sand.u32 1, %s633_s12  }
 0x237   : > { %s371_s20 = scalar_lea.sflag [#allocation4], %s370_s19 }
 0x238   : > { %p492_p10 = pnand %p497_p9, %p715_p6 }
 0x23a   : > { %p493_p11 = pneg %p492_p10 }
 0x23c   : > { %628 = dma.done.wait (%p493_p11), %s371_s20, 512  }
 0x23d   : > { %630 = vsyncadd (%p493_p11), %s371_s20, 4294966784  ;;  %p14_p12 = scmp.ge.s32.totalorder %s698_s18, 4   ;;  %s789_s12 = smov %s637_s13 }
 0x23e   : > { %s790_s13 = smov %s641_s14  ;;  %s791_s14 = smov %s709_s21 }
 0x23f   : > { %s792_s15 = smov %s698_s18  ;;  %16 = sbr.rel (!%p14_p12) target bundleno = 4 (0x4), region = 72 }
 0x244   :  { %377 = vsyncpa [#allocation3], 1 }
 0x245   :  { %379 = vsyncpa [#allocation3 + $0x1], 1 }
 0x246   :  { %380 = vsyncpa [#allocation4], 1 }
 0x247   :  { %382 = vsyncpa [#allocation4 + $0x1], 1 }

</bundles_post_ra>
